<compile_context>
chip_gen: v7x
topology: tpu7x:2x2x1
jax: 0.10.0
libtpu: 0.0.40
codegen_flags: <defaults>
</compile_context>

<pallas_src>
import functools

import jax
import jax.numpy as jnp
from jax.experimental import pallas as pl
from jax.experimental.pallas import tpu as pltpu


def _round_up(x, m):
    return ((x + m - 1) // m) * m


def _fusion_kernel(mm_dtype, split_store, f_last_ref, f_this_ref, wl_ref,
                   wt_ref, bg_ref, out_ref):
    f_last = f_last_ref[...]                        # (TM, last_dim)
    f_this = f_this_ref[...]                        # (TM, this_dim)

    # Gate pre-activation: f_last @ W_last + f_this @ W_this_dup + b_gate.
    # Weights already in mm_dtype (cast once in the wrapper); activations cast
    # here.  Accumulate in f32 on the MXU.
    gate_pre = (
        jnp.dot(f_last.astype(mm_dtype), wl_ref[...],
                preferred_element_type=jnp.float32)
        + jnp.dot(f_this.astype(mm_dtype), wt_ref[...],
                  preferred_element_type=jnp.float32)
        + bg_ref[...])                              # (1, last_dim) f32 broadcast
    gate = jax.nn.sigmoid(gate_pre)                 # f32 (EUP)
    f_last_gate = (f_last.astype(jnp.float32) * gate).astype(out_ref.dtype)

    if split_store:
        # this_dim is a multiple of 128: two disjoint, lane-aligned, unmasked
        # stores; no (TM, out_dim) temporary.
        this_dim = f_this.shape[-1]
        out_ref[:, :this_dim] = f_this.astype(out_ref.dtype)
        out_ref[:, this_dim:] = f_last_gate
    else:
        # Non-128-aligned split point: let Mosaic fuse the lane concat into a
        # single full-tile store.
        out_ref[...] = jnp.concatenate(
            [f_this.astype(out_ref.dtype), f_last_gate], axis=-1)


def prepare_fusion_weights(w_last, b_last, w_this, b_this, *,
                           matmul_dtype=jnp.bfloat16):
    """One-time weight prep (hoist out of the hot path if weights are reused).

    torch.nn.Linear stores W as (out, in); the kernel wants (in, out).  When
    this_dim < last_dim, W_this is pre-duplicated along the output dim and both
    biases are folded into a single gate bias, so the kernel is just two MXU
    matmuls + one broadcast add.
    """
    last_dim = w_last.shape[0]
    this_dim = w_this.shape[0]
    # Inherited PyTorch constraint: the expand/add only works when
    # last_dim == this_dim or last_dim == 2 * this_dim.
    assert last_dim == this_dim or last_dim == 2 * this_dim, (
        f"fusion_category requires last_dim == this_dim or 2*this_dim, "
        f"got last_dim={last_dim}, this_dim={this_dim}")

    wl_io = w_last.T                                            # (last, last)
    wt_io = w_this.T                                            # (this, this)
    if this_dim < last_dim:
        wt_eff = jnp.concatenate([wt_io, wt_io], axis=1)        # (this, last)
        b_gate = b_last + jnp.concatenate([b_this, b_this], axis=0)
    else:
        wt_eff = wt_io
        b_gate = b_last + b_this
    return (wl_io.astype(matmul_dtype),
            wt_eff.astype(matmul_dtype),
            b_gate.reshape(1, last_dim).astype(jnp.float32))


def fusion_category_apply(f_last, f_this, wl_io, wt_eff, b_gate, *, tm=None):
    """Run the fused kernel with pre-prepared weights."""
    B, S, last_dim = f_last.shape
    _, _, this_dim = f_this.shape
    assert wl_io.shape == (last_dim, last_dim)
    assert wt_eff.shape == (this_dim, last_dim)

    M = B * S
    out_dim = this_dim + last_dim
    out_dtype = jnp.promote_types(f_last.dtype, f_this.dtype)
    mm_dtype = wl_io.dtype

    # --- Row-tile sizing -----------------------------------------------------
    row_bytes = (last_dim * f_last.dtype.itemsize
                 + this_dim * f_this.dtype.itemsize
                 + out_dim * jnp.dtype(out_dtype).itemsize)
    weight_bytes = ((last_dim * last_dim + this_dim * last_dim)
                    * jnp.dtype(mm_dtype).itemsize + last_dim * 4)

    if tm is None:
        # ~2 MiB of activation+output traffic per grid step amortizes the
        # ~0.35 us/step overhead (>=85% of HBM roofline per the tiling sweep).
        tm = max(128, (2 * 1024 * 1024) // row_bytes)
        # Double-buffered activation/output tiles + single-buffered weights
        # must fit a conservative ~24 MiB VMEM budget (v7x: 64 MiB physical,
        # v5e: 16 MiB scoped default which we raise below).
        budget = max(row_bytes, 24 * 1024 * 1024 - weight_bytes)
        tm = min(tm, max(8, budget // (2 * row_bytes)))
    # Keep >= 2 grid programs whenever there is enough work so the "parallel"
    # axis can shard across v7x's two TensorCores.
    if M >= 16:
        tm = min(tm, _round_up(pl.cdiv(M, 2), 8))
    tm = min(tm, _round_up(M, 8))
    tm = max(8, (tm // 8) * 8)
    grid = pl.cdiv(M, tm)

    tile_bytes = tm * row_bytes
    vmem_needed = 2 * tile_bytes + 2 * weight_bytes
    vmem_limit = int(min(max(2 * vmem_needed, 16 * 1024 * 1024),
                         48 * 1024 * 1024))

    fl2 = f_last.reshape(M, last_dim)
    ft2 = f_this.reshape(M, this_dim)

    kernel = functools.partial(_fusion_kernel, mm_dtype, this_dim % 128 == 0)

    # Grid-invariant blocks (weights / bias): no need for double-buffering.
    weight_mode = pl.Buffered(1)

    out = pl.pallas_call(
        kernel,
        out_shape=jax.ShapeDtypeStruct((M, out_dim), out_dtype),
        grid_spec=pltpu.PrefetchScalarGridSpec(
            num_scalar_prefetch=0,
            grid=(grid,),
            in_specs=[
                pl.BlockSpec((tm, last_dim), lambda i: (i, 0)),     # f_last
                pl.BlockSpec((tm, this_dim), lambda i: (i, 0)),     # f_this
                pl.BlockSpec((last_dim, last_dim), lambda i: (0, 0),
                             pipeline_mode=weight_mode),            # W_last
                pl.BlockSpec((this_dim, last_dim), lambda i: (0, 0),
                             pipeline_mode=weight_mode),            # W_this dup
                pl.BlockSpec((1, last_dim), lambda i: (0, 0),
                             pipeline_mode=weight_mode),            # b_gate
            ],
            out_specs=pl.BlockSpec((tm, out_dim), lambda i: (i, 0)),
        ),
        compiler_params=pltpu.CompilerParams(
            dimension_semantics=("parallel",),
            vmem_limit_bytes=vmem_limit),
    )(fl2, ft2, wl_io, wt_eff, b_gate)

    return out.reshape(B, S, out_dim)


def fusion_category_pallas(f_last, f_this, w_last, b_last, w_this, b_this,
                           *, tm=None, matmul_dtype=None):
    """Convenience wrapper: weight prep + kernel call."""
    if matmul_dtype is None:
        in_dtype = jnp.promote_types(f_last.dtype, f_this.dtype)
        # MXU is bf16-native on v5e/v6e/v7x; gate math stays f32.
        matmul_dtype = jnp.bfloat16 if in_dtype == jnp.float32 else in_dtype
    wl_io, wt_eff, b_gate = prepare_fusion_weights(
        w_last, b_last, w_this, b_this, matmul_dtype=matmul_dtype)
    return fusion_category_apply(f_last, f_this, wl_io, wt_eff, b_gate, tm=tm)


def fusion_category_ref(f_last, f_this, w_last, b_last, w_this, b_this):
    """Pure-JAX reference mirroring the PyTorch forward."""
    f_this_trans = f_this @ w_this.T + b_this
    f_last_trans = f_last @ w_last.T + b_last
    if f_this_trans.shape[2] < f_last_trans.shape[2]:
        f_this_expand = jnp.concatenate([f_this_trans, f_this_trans], axis=-1)
    else:
        f_this_expand = f_this_trans
    gate = jax.nn.sigmoid(f_last_trans + f_this_expand)
    f_last_gate = f_last * gate
    return jnp.concatenate([f_this, f_last_gate], axis=-1)


def _make_params(key, last_dim, this_dim):
    k3, k4, k5, k6 = jax.random.split(key, 4)
    bound_l = 1.0 / (last_dim ** 0.5)
    bound_t = 1.0 / (this_dim ** 0.5)
    w_last = jax.random.uniform(k3, (last_dim, last_dim), jnp.float32,
                                -bound_l, bound_l)
    b_last = jax.random.uniform(k4, (last_dim,), jnp.float32,
                                -bound_l, bound_l)
    w_this = jax.random.uniform(k5, (this_dim, this_dim), jnp.float32,
                                -bound_t, bound_t)
    b_this = jax.random.uniform(k6, (this_dim,), jnp.float32,
                                -bound_t, bound_t)
    return w_last, b_last, w_this, b_this


if __name__ == "__main__":
    key = jax.random.PRNGKey(0)
    k_in1, k_p1, k_in2, k_p2, k_in3, k_p3 = jax.random.split(key, 6)

    # --- Case 1: this_dim < last_dim (expand branch), default bf16 matmuls.
    B, S = 2, 8
    this_dim, last_dim = 32, 64
    k1, k2 = jax.random.split(k_in1)
    f_last = jax.random.normal(k1, (B, S, last_dim), dtype=jnp.float32)
    f_this = jax.random.normal(k2, (B, S, this_dim), dtype=jnp.float32)
    w_last, b_last, w_this, b_this = _make_params(k_p1, last_dim, this_dim)

    out = jax.block_until_ready(
        fusion_category_pallas(f_last, f_this, w_last, b_last, w_this, b_this))
    ref = fusion_category_ref(f_last, f_this, w_last, b_last, w_this, b_this)
    assert out.shape == (B, S, this_dim + last_dim)
    assert jnp.allclose(out, ref, atol=3e-2, rtol=3e-2)   # bf16 matmul path

    # --- Case 2: this_dim == last_dim, ragged M (15 rows, tm=8 -> partial
    #     last tile, no wrapper pad/slice), f32 matmuls, tight tolerance.
    B2, S2 = 3, 5
    this_dim2 = last_dim2 = 64
    k1b, k2b = jax.random.split(k_in2)
    f_last2 = jax.random.normal(k1b, (B2, S2, last_dim2), dtype=jnp.float32)
    f_this2 = jax.random.normal(k2b, (B2, S2, this_dim2), dtype=jnp.float32)
    w_last2, b_last2, w_this2, b_this2 = _make_params(k_p2, last_dim2,
                                                      this_dim2)
    out2 = jax.block_until_ready(
        fusion_category_pallas(f_last2, f_this2, w_last2, b_last2, w_this2,
                               b_this2, tm=8, matmul_dtype=jnp.float32))
    ref2 = fusion_category_ref(f_last2, f_this2, w_last2, b_last2, w_this2,
                               b_this2)
    assert out2.shape == (B2, S2, this_dim2 + last_dim2)
    assert jnp.allclose(out2, ref2, atol=1e-2, rtol=1e-2)

    # --- Case 3: 128-aligned dims (split-store path) with hoisted weight prep.
    B3, S3 = 2, 8
    this_dim3 = last_dim3 = 128
    k1c, k2c = jax.random.split(k_in3)
    f_last3 = jax.random.normal(k1c, (B3, S3, last_dim3), dtype=jnp.float32)
    f_this3 = jax.random.normal(k2c, (B3, S3, this_dim3), dtype=jnp.float32)
    w_last3, b_last3, w_this3, b_this3 = _make_params(k_p3, last_dim3,
                                                      this_dim3)
    prepped = prepare_fusion_weights(w_last3, b_last3, w_this3, b_this3,
                                     matmul_dtype=jnp.bfloat16)
    out3 = jax.block_until_ready(
        fusion_category_apply(f_last3, f_this3, *prepped))
    ref3 = fusion_category_ref(f_last3, f_this3, w_last3, b_last3, w_this3,
                               b_this3)
    assert out3.shape == (B3, S3, this_dim3 + last_dim3)
    assert jnp.allclose(out3, ref3, atol=3e-2, rtol=3e-2)

    print("KERNEL_OK")
</pallas_src>

<mosaic_0001>
module attributes {stable_mosaic.version = 11 : i64} {
  func.func @_fusion_kernel(%arg0: i32, %arg1: memref<8x64xf32, #tpu.memory_space<vmem>>, %arg2: memref<8x32xf32, #tpu.memory_space<vmem>>, %arg3: memref<64x64xbf16, #tpu.memory_space<vmem>>, %arg4: memref<32x64xbf16, #tpu.memory_space<vmem>>, %arg5: memref<1x64xf32, #tpu.memory_space<vmem>>, %arg6: memref<8x96xf32, #tpu.memory_space<vmem>>) attributes {dimension_semantics = [#tpu.dimension_semantics<parallel>], iteration_bounds = array<i64: 2>, scalar_prefetch = 0 : i64, scratch_operands = 0 : i64, tpu.core_type = #tpu.core_type<tc>, window_params = [{transform_indices = @transform_0, window_bounds = array<i64: 8, 64>}, {transform_indices = @transform_1, window_bounds = array<i64: 8, 32>}, {pipeline_mode = #tpu.pipeline_mode<synchronous>, transform_indices = @transform_2, window_bounds = array<i64: 64, 64>}, {pipeline_mode = #tpu.pipeline_mode<synchronous>, transform_indices = @transform_3, window_bounds = array<i64: 32, 64>}, {pipeline_mode = #tpu.pipeline_mode<synchronous>, transform_indices = @transform_4, window_bounds = array<i64: 1, 64>}, {transform_indices = @transform_5, window_bounds = array<i64: 8, 96>}]} {
    %c0 = arith.constant 0 : index
    %c0_0 = arith.constant 0 : index
    %0 = vector.load %arg1[%c0, %c0_0] : memref<8x64xf32, #tpu.memory_space<vmem>>, vector<8x64xf32>
    %c0_1 = arith.constant 0 : index
    %c0_2 = arith.constant 0 : index
    %1 = vector.load %arg2[%c0_1, %c0_2] : memref<8x32xf32, #tpu.memory_space<vmem>>, vector<8x32xf32>
    %2 = arith.truncf %0 : vector<8x64xf32> to vector<8x64xbf16>
    %c0_3 = arith.constant 0 : index
    %c0_4 = arith.constant 0 : index
    %3 = vector.load %arg3[%c0_3, %c0_4] : memref<64x64xbf16, #tpu.memory_space<vmem>>, vector<64x64xbf16>
    %cst = arith.constant dense<0.000000e+00> : vector<8x64xf32>
    %4 = tpu.matmul %2, %3, %cst {dimension_numbers = #tpu.dot_dimension_numbers<[1], [0], [0], [1], [0, 0, 1, 1], [], []>} : vector<8x64xbf16>, vector<64x64xbf16>, vector<8x64xf32> -> vector<8x64xf32>
    %5 = arith.truncf %1 : vector<8x32xf32> to vector<8x32xbf16>
    %c0_5 = arith.constant 0 : index
    %c0_6 = arith.constant 0 : index
    %6 = vector.load %arg4[%c0_5, %c0_6] : memref<32x64xbf16, #tpu.memory_space<vmem>>, vector<32x64xbf16>
    %cst_7 = arith.constant dense<0.000000e+00> : vector<8x64xf32>
    %7 = tpu.matmul %5, %6, %cst_7 {dimension_numbers = #tpu.dot_dimension_numbers<[1], [0], [0], [1], [0, 0, 1, 1], [], []>} : vector<8x32xbf16>, vector<32x64xbf16>, vector<8x64xf32> -> vector<8x64xf32>
    %8 = arith.addf %4, %7 : vector<8x64xf32>
    %c0_8 = arith.constant 0 : index
    %c0_9 = arith.constant 0 : index
    %9 = vector.load %arg5[%c0_8, %c0_9] : memref<1x64xf32, #tpu.memory_space<vmem>>, vector<1x64xf32>
    %10 = vector.broadcast %9 : vector<1x64xf32> to vector<8x64xf32>
    %11 = arith.addf %8, %10 : vector<8x64xf32>
    %12 = arith.negf %11 : vector<8x64xf32>
    %13 = math.exp %12 : vector<8x64xf32>
    %cst_10 = arith.constant 1.000000e+00 : f32
    %14 = vector.broadcast %cst_10 : f32 to vector<8x64xf32>
    %15 = arith.addf %14, %13 : vector<8x64xf32>
    %16 = arith.divf %14, %15 : vector<8x64xf32>
    %17 = arith.mulf %0, %16 : vector<8x64xf32>
    %18 = tpu.concatenate %1, %17 in 1 : vector<8x32xf32>, vector<8x64xf32> -> vector<8x96xf32>
    %c0_11 = arith.constant 0 : index
    %c0_12 = arith.constant 0 : index
    %19 = vector.load %arg6[%c0_11, %c0_12] : memref<8x96xf32, #tpu.memory_space<vmem>>, vector<8x96xf32>
    tpu.vector_store %arg6[%c0_11, %c0_12], %18 {strides = array<i32>} : memref<8x96xf32, #tpu.memory_space<vmem>>, vector<8x96xf32>,
    return
  }
  func.func @transform_0(%arg0: i32) -> (i32, i32) {
    %c0_i32 = arith.constant 0 : i32
    %c0_i32_0 = arith.constant 0 : i32
    return %arg0, %c0_i32 : i32, i32
  }
  func.func @transform_1(%arg0: i32) -> (i32, i32) {
    %c0_i32 = arith.constant 0 : i32
    %c0_i32_0 = arith.constant 0 : i32
    return %arg0, %c0_i32 : i32, i32
  }
  func.func @transform_2(%arg0: i32) -> (i32, i32) {
    %c0_i32 = arith.constant 0 : i32
    %c0_i32_0 = arith.constant 0 : i32
    %c0_i32_1 = arith.constant 0 : i32
    return %c0_i32, %c0_i32_0 : i32, i32
  }
  func.func @transform_3(%arg0: i32) -> (i32, i32) {
    %c0_i32 = arith.constant 0 : i32
    %c0_i32_0 = arith.constant 0 : i32
    %c0_i32_1 = arith.constant 0 : i32
    return %c0_i32, %c0_i32_0 : i32, i32
  }
  func.func @transform_4(%arg0: i32) -> (i32, i32) {
    %c0_i32 = arith.constant 0 : i32
    %c0_i32_0 = arith.constant 0 : i32
    %c0_i32_1 = arith.constant 0 : i32
    return %c0_i32, %c0_i32_0 : i32, i32
  }
  func.func @transform_5(%arg0: i32) -> (i32, i32) {
    %c0_i32 = arith.constant 0 : i32
    %c0_i32_0 = arith.constant 0 : i32
    return %arg0, %c0_i32 : i32, i32
  }
}

</mosaic_0001>

<bundles_post_ra>
// kernel: tpu_custom_call.1
= control target key start
LH: loop header
LB: loop body
LE: loop exit
PB: predicated region body
PF: predicated region fallthrough
CT: control target
= control target key end

     0   :  { %s1256_s0 = inlined_call_operand.hbm [shape: f32[16,64], index: 0, kind: input, shape index: {}]   ;;  %s1257_s1 = inlined_call_operand.hbm [shape: f32[16,32], index: 1, kind: input, shape index: {}]   ;;  %s1258_s2 = inlined_call_operand.hbm [shape: bf16[64,64], index: 2, kind: input, shape index: {}]   ;;  %s1259_s3 = inlined_call_operand.hbm [shape: bf16[32,64], index: 3, kind: input, shape index: {}]   ;;  %s1260_s4 = inlined_call_operand.vmem [shape: f32[1,64], index: 4, kind: input, shape index: {}]   ;;  %s1261_s5 = inlined_call_operand.hbm [shape: f32[16,96], index: 5, kind: output, shape index: {}]  }
   0x1   :  { %1266 = sst [smem:[#allocation16_spill]] %s1258_s2 }
   0x2   :  { %1267 = sst [smem:[#allocation17_spill]] %s1259_s3 }
   0x3   :  { %10 = vsyncpa [#allocation3], 0 }
   0x4   :  { %12 = vsyncpa [#allocation3 + $0x1], 0 }
   0x5   :  { %13 = vsyncpa [#allocation6], 0 }
   0x6   :  { %15 = vsyncpa [#allocation6 + $0x1], 0 }
   0x7   :  { %16 = vsyncpa [#allocation9], 0 }
   0x8   :  { %17 = vsyncpa [#allocation4], 0 }
   0x9   :  { %19 = vsyncpa [#allocation4 + $0x1], 0  ;;  %s975_s18 = smov 0   ;;  %s977_s19 = smov 0  }
   0xa   :  { %s979_s20 = smov 0   ;;  %s981_s21 = smov 0  }
   0xb LB: > { %s996_s22 = sadd.s32 4294967295, %s933_s21   ;;  %s595_s23 = sadd.s32 4294967294, %s933_s21   ;;  %s933_s21 = sphi %s981_s21, %s1289_s21   ;;  %s929_s20 = sphi %s979_s20, %s1288_s20   ;;  %s925_s19 = sphi %s977_s19, %s1287_s19   ;;  %s921_s18 = sphi %s975_s18, %s1286_s18  }
   0xc   : > { %p45_p0 = scmp.ne.s32.totalorder %s925_s19, %s921_s18  ;;  %p1262_p1 = scmp.eq.s32.totalorder %s996_s22, 0 }
   0xd   : > { %p164_p3 = scmp.eq.s32.totalorder %s595_s23, 1  ;;  %p596_p5 = scmp.ge.s32.totalorder %s933_s21, 1 }
   0xe   : > { %p1005_p4 = por %p1262_p1, %p45_p0  ;;  %p171_p7 = scmp.lt.s32.totalorder %s933_s21, 3 }
   0xf   : > { %p1010_p6 = por %p164_p3, %p45_p0  ;;  %s935_s27 = smov [#allocation7]  }
  0x10   : > { %s1268_s24 = scalar_select %p1005_p4, 1, 0 }
  0x11   : > { %s1269_s25 = scalar_select %p1010_p6, 1, 0 }
  0x12   : > { %p1015_p8 = pnand %p596_p5, %p171_p7  ;;  %s183_s28 = sshll.u32 %s935_s27, 4  ;;  %s1019_s28 = int_to_ptr.vmem [resolvable:$true] %s183_s28 }
  0x13   : > { %s936_s30 = smov [#allocation8]   ;;  %s1272_s2 = sld [smem:[#allocation16_spill]] }
  0x14   : > { %s1270_s26 = scalar_select %p1015_p8, 1, 0 }
  0x15   : > { %p666_p9 = pneg %p1015_p8  ;;  %s196_s6 = sshll.u32 %s936_s30, 4  ;;  %s1030_s6 = int_to_ptr.vmem [resolvable:$true] %s196_s6 }
  0x17   : > { %p1026_p11 = pnand %p666_p9, %p1262_p1 }
  0x19   : > { %s739_s9 = scalar_lea.hbm %s1272_s2, 512  ;;  %p741_p13 = pneg %p1026_p11 }
  0x1a   : > { %p740_p12 = scmp.ne.s32.totalorder %s1272_s2, %s739_s9  ;;  %p746_p5 = scmp.lt.u32.totalorder %s739_s9, %s1272_s2 }
  0x1c   : > { %p742_p0 = pnand %p741_p13, %p740_p12 }
  0x1e   : > { %p743_p3 = pneg %p742_p0 }
  0x20   : > { %p748_p7 = pnand %p746_p5, %p743_p3 }
  0x22   : > { %751 = shalt.err (!%p748_p7)
}
  0x23   : > { %s752_s14 = scalar_lea.vmem %s1019_s28, 512  ;;  %p760_p2 = scmp.lt.s32.totalorder %s1019_s28, %s1019_s28 }
  0x24   : > { %p753_p9 = scmp.ne.s32.totalorder %s1019_s28, %s752_s14  ;;  %p761_p12 = scmp.lt.s32.totalorder %s752_s14, %s752_s14 }
  0x26   : > { %p755_p10 = pnand %p753_p9, %p741_p13  ;;  %p762_p0 = por %p761_p12, %p760_p2 }
  0x28   : > { %p756_p1 = pneg %p755_p10 }
  0x2a   : > { %p763_p6 = pnand %p762_p0, %p756_p1 }
  0x2c   : > { %766 = shalt.err (!%p763_p6)
}
  0x2d   : > { %s937_s15 = smov 64   ;;  %s938_s16 = smov 4  }
  0x2e   : > { %669 = dma.hbm_to_vmem [thread:$0]  (!%p1026_p11), %s1272_s2, 512, %s1019_s28, [#allocation6], %s937_s15, %s937_s15, %s938_s16  }
  0x2f   : > { %s1273_s3 = sld [smem:[#allocation17_spill]] }
  0x35   : > { %s767_s7 = scalar_lea.hbm %s1273_s3, 256 }
  0x36   : > { %p768_p2 = scmp.ne.s32.totalorder %s1273_s3, %s767_s7  ;;  %p774_p10 = scmp.lt.u32.totalorder %s767_s7, %s1273_s3 }
  0x38   : > { %p770_p1 = pnand %p768_p2, %p741_p13 }
  0x3a   : > { %p771_p6 = pneg %p770_p1 }
  0x3c   : > { %p776_p3 = pnand %p774_p10, %p771_p6 }
  0x3e   : > { %779 = shalt.err (!%p776_p3)
}
  0x3f   : > { %s780_s28 = scalar_lea.vmem %s1030_s6, 256  ;;  %p788_p12 = scmp.lt.s32.totalorder %s1030_s6, %s1030_s6 }
  0x40   : > { %p781_p5 = scmp.ne.s32.totalorder %s1030_s6, %s780_s28  ;;  %p789_p0 = scmp.lt.s32.totalorder %s780_s28, %s780_s28 }
  0x42   : > { %p783_p7 = pnand %p781_p5, %p741_p13  ;;  %p790_p2 = por %p789_p0, %p788_p12 }
  0x44   : > { %p784_p9 = pneg %p783_p7 }
  0x46   : > { %p791_p1 = pnand %p790_p2, %p784_p9 }
  0x48   : > { %794 = shalt.err (!%p791_p1)
}
  0x49   : > { %672 = dma.hbm_to_vmem [thread:$0]  (!%p1026_p11), %s1273_s3, 256, %s1030_s6, [#allocation9], %s937_s15, %s937_s15, %s938_s16  }
  0x4a   : > { %s1085_s14 = sadd.s32 1, %s933_s21   ;;  %s32_s29 = sadd.s32 1, %s929_s20 }
  0x4b   : > { %s29_s17 = ssub.s32 %s933_s21, %s1085_s14  ;;  %p39_p13 = scmp.ne.s32.totalorder %s929_s20, %s925_s19 }
  0x4c   : > { %p30_p6 = scmp.eq.s32.totalorder %s29_s17, 0  ;;  %p40_p10 = scmp.eq.s32.totalorder %s933_s21, 0 }
  0x4d   : > { %p1274_p3 = scmp.eq.s32.totalorder %s996_s22, 1  ;;  %p686_p7 = scmp.lt.s32.totalorder %s933_s21, 2 }
  0x4e   : > { %s1101_s27 = scalar_select %p30_p6, %s929_s20, %s32_s29  }
  0x4f   : > { %p1095_p5 = por %p1274_p3, %p39_p13  ;;  %p41_p9 = por %p40_p10, %p39_p13 }
  0x50   : > { %s213_s30 = sand.u32 1, %s929_s20   ;;  %s601_s15 = sshll.u32 %s933_s21, 7 }
  0x51   : > { %s1275_s23 = scalar_select %p1095_p5, 1, 0 }
  0x52   : > { %s1104_s6 = sshll.u32 %s213_s30, 3  ;;  %s1110_s8 = scalar_lea.hbm %s1256_s0, %s601_s15 }
  0x53   : > { %s217_s9 = scalar_lea.vmem [#allocation2], %s1104_s6  ;;  %p1115_p11 = pnand %p686_p7, %p41_p9 }
  0x54   : > { %s224_s10 = sshll.u32 %s217_s9, 4  ;;  %s1122_s13 = scalar_lea.hbm %s1257_s1, %s601_s15  ;;  %s1113_s10 = int_to_ptr.vmem [resolvable:$true] %s224_s10 }
  0x55   : > { %s231_s29 = sand.u32 1, %s933_s21   ;;  %s214_s17 = scalar_lea.sflag [#allocation3], %s213_s30 }
  0x56   : > { %s795_s16 = scalar_lea.hbm %s1110_s8, 128  ;;  %p797_p0 = pneg %p1115_p11 }
  0x57   : > { %p796_p12 = scmp.ne.s32.totalorder %s1110_s8, %s795_s16  ;;  %s800_s2 = scalar_lea.hbm %s1256_s0, 256 }
  0x58   : > { %p801_p13 = scmp.lt.u32.totalorder %s1110_s8, %s1256_s0  ;;  %p802_p6 = scmp.lt.u32.totalorder %s800_s2, %s795_s16 }
  0x59   : > { %p798_p2 = pnand %p797_p0, %p796_p12  ;;  %p804_p3 = scmp.lt.u32.totalorder %s795_s16, %s1110_s8 }
  0x5a   : > { %p803_p10 = por %p802_p6, %p801_p13 }
  0x5b   : > { %p799_p1 = pneg %p798_p2 }
  0x5c   : > { %p805_p7 = por %p804_p3, %p803_p10 }
  0x5e   : > { %p806_p9 = pnand %p805_p7, %p799_p1 }
  0x60   : > { %809 = shalt.err (!%p806_p9)
}
  0x61   : > { %s810_s30 = scalar_lea.vmem %s1113_s10, 128  ;;  %s939_s15 = smov [#allocation2]  }
  0x62   : > { %p811_p12 = scmp.ne.s32.totalorder %s1113_s10, %s810_s30  ;;  %s815_s12 = sshll.u32 %s939_s15, 4  ;;  %s816_s12 = int_to_ptr.vmem [resolvable:$false] %s815_s12 }
  0x63   : > { %s817_s3 = scalar_lea.vmem %s816_s12, 256  ;;  %p818_p4 = scmp.lt.s32.totalorder %s1113_s10, %s816_s12 }
  0x64   : > { %p813_p2 = pnand %p811_p12, %p797_p0  ;;  %p819_p13 = scmp.lt.s32.totalorder %s817_s3, %s810_s30 }
  0x66   : > { %p814_p5 = pneg %p813_p2  ;;  %p820_p6 = por %p819_p13, %p818_p4 }
  0x68   : > { %p821_p10 = pnand %p820_p6, %p814_p5 }
  0x6a   : > { %824 = shalt.err (!%p821_p10)
}
  0x6b   : > { %676 = dma.hbm_to_vmem [thread:$0]  (!%p1115_p11), %s1110_s8, 128, %s1113_s10, %s214_s17  }
  0x6c   : > { %s235_s2 = scalar_lea.vmem [#allocation5], %s1104_s6  ;;  %s232_s7 = scalar_lea.sflag [#allocation6], %s231_s29 }
  0x6d   : > { %s242_s16 = sshll.u32 %s235_s2, 4  ;;  %s825_s9 = scalar_lea.hbm %s1122_s13, 128  ;;  %s243_s16 = int_to_ptr.vmem [resolvable:$true] %s242_s16 }
  0x6e   : > { %p826_p4 = scmp.ne.s32.totalorder %s1122_s13, %s825_s9  ;;  %s830_s15 = scalar_lea.hbm %s1257_s1, 256 }
  0x6f   : > { %p831_p3 = scmp.lt.u32.totalorder %s1122_s13, %s1257_s1  ;;  %p832_p7 = scmp.lt.u32.totalorder %s830_s15, %s825_s9 }
  0x70   : > { %p828_p5 = pnand %p826_p4, %p797_p0  ;;  %p834_p12 = scmp.lt.u32.totalorder %s825_s9, %s1122_s13 }
  0x71   : > { %p833_p9 = por %p832_p7, %p831_p3 }
  0x72   : > { %p829_p1 = pneg %p828_p5 }
  0x73   : > { %p835_p2 = por %p834_p12, %p833_p9 }
  0x75   : > { %p836_p13 = pnand %p835_p2, %p829_p1 }
  0x77   : > { %839 = shalt.err (!%p836_p13)
}
  0x78   : > { %s840_s6 = scalar_lea.vmem %s243_s16, 128  ;;  %s940_s8 = smov [#allocation5]  }
  0x79   : > { %p841_p6 = scmp.ne.s32.totalorder %s243_s16, %s840_s6  ;;  %s845_s10 = sshll.u32 %s940_s8, 4  ;;  %s846_s10 = int_to_ptr.vmem [resolvable:$false] %s845_s10 }
  0x7a   : > { %s847_s29 = scalar_lea.vmem %s846_s10, 256  ;;  %p848_p5 = scmp.lt.s32.totalorder %s243_s16, %s846_s10 }
  0x7b   : > { %p843_p10 = pnand %p841_p6, %p797_p0  ;;  %p849_p8 = scmp.lt.s32.totalorder %s847_s29, %s840_s6 }
  0x7d   : > { %p844_p4 = pneg %p843_p10  ;;  %p850_p3 = por %p849_p8, %p848_p5 }
  0x7f   : > { %p851_p7 = pnand %p850_p3, %p844_p4 }
  0x81   : > { %854 = shalt.err (!%p851_p7)
}
  0x82   : > { %679 = dma.hbm_to_vmem [thread:$0]  (!%p1115_p11), %s1122_s13, 128, %s243_s16, %s232_s7  }
  0x83   : > { %p1277_p1 = scmp.ne.s32.totalorder %s1270_s26, 0 }
  0x84   : > { %s1175_s17 = sand.u32 (!%p1277_p1), 1, %s925_s19   ;;  %p1278_p8 = scmp.ne.s32.totalorder (!%p1277_p1), %s1268_s24, 0 }
  0x85   : > { %251 = sbr.rel (%p1277_p1) target bundleno = 543 (0x21f), region = 40  ;;  %s1178_s2 = sshll.u32 (!%p1277_p1), %s1175_s17, 3 }
  0x86   : > { %s254_s9 = scalar_lea.sflag (!%p1277_p1), [#allocation3], %s1175_s17  ;;  %s257_s28 = scalar_lea.vmem (!%p1277_p1), [#allocation2], %s1178_s2 }
  0x8c   : > { %900 = dma.done.wait (%p1278_p8), %s254_s9, 128  }
  0x8d   : > { %902 = vsyncadd (%p1278_p8), %s254_s9, 4294967168  ;;  %s262_s26 = sand.u32 1, %s996_s22   ;;  %s266_s13 = scalar_lea.vmem [#allocation5], %s1178_s2 }
  0x8e   : > { %s263_s11 = scalar_lea.sflag [#allocation6], %s262_s26 }
  0x8f   : > { %904 = dma.done.wait (%p1278_p8), %s263_s11, 128  }
  0x90   : > { %906 = vsyncadd (%p1278_p8), %s263_s11, 4294967168  ;;  %p1279_p11 = scmp.eq.s32.totalorder %s996_s22, 0 }
  0x92   : > { %908 = dma.done.wait (%p1279_p11), [#allocation6], 512   ;;  %p1280_p0 = pmov %p1279_p11 }
  0x94   : > { %910 = vsyncadd (%p1280_p0), [#allocation6], 4294966784  ;;  %p1281_p9 = pmov %p1280_p0 }
  0x95   : > { %p1282_p12 = pmov %p1280_p0 }
  0x96   : > { %912 = dma.done.wait (%p1281_p9), [#allocation9], 256  }
  0x97   : > { %914 = vsyncadd (%p1282_p12), [#allocation9], 4294967040  ;;  %v941_v0 = vmov 0.0   ;;  %vm942_vm0 = vmmov 0   ;;  %v729_v1 = vld [vmem:[#allocation7] sm:$0xff]   ;;  %v730_v2 = vld [vmem:[#allocation7 + $0x8] sm:$0xff]  }
  0x98   : > { %640 = vmatprep.subr.bf16.mxu1 %v941_v0  ;;  %632 = vmatprep.subr.bf16.mxu0 %v941_v0  ;;  %v731_v3 = vld [vmem:[#allocation8] sm:$0xff]   ;;  %v733_v4 = vld [vmem:[#allocation8 + $0x8] sm:$0xff]   ;;  %v308_v5 = vld [vmem:[%s266_s13] sm:$0xff]  ;;  %vm335_vm1 = vcmask 261120   ;;  %vm403_vm2 = vcmask 523264   ;;  %s943_s7 = smov 32  }
  0x99   : > { %636 = vmatprep.mubr.msk.bf16.mxu0 %vm942_vm0, %v941_v0  ;;  %648 = vmatprep.mubr.msk.bf16.mxu1 %vm942_vm0, %v941_v0  ;;  %v732_v6 = vld [vmem:[#allocation7 + $0x10] sm:$0xff]   ;;  %v318_v7 = vpack.c.bf16 %v308_v5, %v308_v5  ;;  %v734_v8 = vld [vmem:[#allocation7 + $0x18] sm:$0xff]   ;;  %v307_v9 = vld [vmem:[%s257_s28] sm:$0xff]  ;;  %s621_s30 = sshll.u32 %s996_s22, 7  ;;  %s305_s15 = scalar_lea.vmem [#allocation10], %s1178_s2  ;;  %vm467_vm3 = vcmask 785408  }
  0x9a   : > { %641 = vmatpush3.bf16.msra.mxu1 %v729_v1  ;;  %633 = vmatpush3.bf16.msra.mxu0 %v731_v3  ;;  %v309_v10 = vpack.c.bf16 %v307_v9, %v307_v9  ;;  %v618_v16 = vld [vmem:[%s1260_s4] ss:$0 sm:$0xff]  ;;  %s483_s12 = sshll.u32 %s305_s15, 4  ;;  %s1211_s8 = scalar_lea.hbm %s1261_s5, %s621_s30  ;;  %s1213_s12 = int_to_ptr.vmem [resolvable:$true] %s483_s12 }
  0x9b   : > { %642 = vmatprep.subr.bf16.mxu1 %v941_v0  ;;  %634 = vmatprep.subr.bf16.mxu0 %v941_v0  ;;  %s470_s10 = scalar_lea.sflag [#allocation4], %s1175_s17  ;;  %s855_s29 = scalar_lea.vmem %s1213_s12, 128 }
  0x9c   : > { %p856_p2 = scmp.ne.s32.totalorder %s1213_s12, %s855_s29  ;;  %p1283_p13 = scmp.ne.s32.totalorder %s1275_s23, 0 }
  0x9d   : > { %s944_s22 = smov [#allocation10]  }
  0x9e   : > { %643 = vmatpush3.bf16.msra.mxu1 %v730_v2  ;;  %635 = vmatpush3.bf16.msra.mxu0 %v733_v4  ;;  %p857_p6 = pnand %p856_p2, %p1283_p13  ;;  %s859_s2 = sshll.u32 %s944_s22, 4  ;;  %s860_s2 = int_to_ptr.vmem [resolvable:$false] %s859_s2 }
  0x9f   : > { %644 = vmatprep.subr.bf16.mxu1 %v941_v0  ;;  %s861_s9 = scalar_lea.vmem %s860_s2, 256  ;;  %p862_p4 = scmp.lt.s32.totalorder %s1213_s12, %s860_s2 }
  0xa0   : > { %p858_p10 = pneg %p857_p6  ;;  %p863_p5 = scmp.lt.s32.totalorder %s861_s9, %s855_s29 }
  0xa1   : > { %637 = vmatmul.mubr.msk.bf16.vlgmr.msra.gmra.mrb[0].mxu0 %vm335_vm1, %v318_v7 }
  0xa2   : > { %645 = vmatpush3.bf16.msra.mxu1 %v732_v6  ;;  %p864_p3 = por %p863_p5, %p862_p4 }
  0xa3   : > { %646 = vmatprep.subr.bf16.mxu1 %v941_v0 }
  0xa4   : > { %p865_p7 = pnand %p864_p3, %p858_p10 }
  0xa6   : > { %647 = vmatpush3.bf16.msra.mxu1 %v734_v8 }
  0xa9   : > { %649 = vmatmul.mubr.msk.bf16.vlgmr.msra.gmra.mrb[0].mxu1 %vm403_vm2, %v309_v10 }
 0x174   : > { %v373_v11 = vpop.f32.mrb[0].mxu0 }
 0x175   : > { %v638_v12 = vpop.f32.mrb[1].mxu0 }
 0x176   : > { %v376_v13 = vpop.f32.mrb[2].mxu0 }
 0x177   : > { %v639_v14 = vpop.f32.mrb[3].mxu0 }
 0x17c   : > { %v441_v15 = vpop.f32.mrb[0].mxu1 }
 0x17d   : > { %v442_v17 = vadd.f32 %v441_v15, %v373_v11  ;;  %v650_v18 = vpop.f32.mrb[1].mxu1 }
 0x17e   : > { %v444_v19 = vpop.f32.mrb[2].mxu1 }
 0x17f   : > { %v454_v20 = vadd.f32 %v618_v16, %v442_v17  ;;  %v651_v21 = vpop.f32.mrb[3].mxu1 }
 0x181   : > { %v619_v22 = vmul.f32 -1.442695, %v454_v20 }
 0x183   : > { %735 = vpow2.f32 %v619_v22 }
 0x18d   : > { %v736_v23 = vpop.eup %735 }
 0x18e   : > { %v458_v24 = vadd.f32 1.0, %v736_v23 }
 0x190   : > { %737 = vrcp.f32 %v458_v24 }
 0x19a   : > { %v738_v25 = vpop.eup %737 }
 0x19b   : > { %v461_v26 = vmul.f32 %v738_v25, %v307_v9 }
 0x19d   : > { %463 = vrot.lane.b32.xlu0 %v461_v26, %s943_s7 }
 0x20f   : > { %v464_v27 = vpop.permute.xlu0 %463 }
 0x210   : > { %v466_v28 = vsel %vm335_vm1, %v308_v5, %v464_v27 }
 0x211   : > { %468 = vst.msk [vmem:[%s305_s15] sm:$0xff] %vm467_vm3, %v466_v28 }
 0x212   : > { %868 = shalt.err (!%p865_p7)
}
 0x213   : > { %s869_s17 = scalar_lea.hbm %s1211_s8, 128  ;;  %s873_s11 = scalar_lea.hbm %s1261_s5, 256 }
 0x214   : > { %p870_p1 = scmp.ne.s32.totalorder %s1211_s8, %s869_s17  ;;  %p874_p0 = scmp.lt.u32.totalorder %s1211_s8, %s1261_s5 }
 0x215   : > { %p875_p9 = scmp.lt.u32.totalorder %s873_s11, %s869_s17  ;;  %p877_p2 = scmp.lt.u32.totalorder %s869_s17, %s1211_s8 }
 0x216   : > { %p871_p8 = pnand %p870_p1, %p1283_p13 }
 0x217   : > { %p876_p12 = por %p875_p9, %p874_p0 }
 0x218   : > { %p872_p11 = pneg %p871_p8 }
 0x219   : > { %p878_p6 = por %p877_p2, %p876_p12 }
 0x21b   : > { %p879_p10 = pnand %p878_p6, %p872_p11 }
 0x21d   : > { %882 = shalt.err (!%p879_p10)
}
 0x21e   : > { %664 = dma.vmem_to_hbm [thread:$0]  (%p1283_p13), %s1213_s12, 128, %s1211_s8, %s470_s10  }
 0x21f PF: > { %s495_s16 = sand.u32 1, %s921_s18   ;;  %p1284_p4 = scmp.ne.s32.totalorder %s1269_s25, 0 }
 0x220   : > { %p1285_p5 = scmp.ge.s32.totalorder %s933_s21, 2  ;;  %s496_s7 = scalar_lea.sflag [#allocation4], %s495_s16 }
 0x222   : > { %p681_p3 = pnand %p1285_p5, %p1284_p4 }
 0x224   : > { %916 = dma.done.wait (!%p681_p3), %s496_s7, 128  }
 0x225   : > { %918 = vsyncadd (!%p681_p3), %s496_s7, 4294967168  ;;  %p22_p7 = scmp.ge.s32.totalorder %s1085_s14, 4   ;;  %s1286_s18 = smov %s925_s19 }
 0x226   : > { %s1287_s19 = smov %s929_s20  ;;  %s1288_s20 = smov %s1101_s27 }
 0x227   : > { %s1289_s21 = smov %s1085_s14  ;;  %24 = sbr.rel (!%p22_p7) target bundleno = 11 (0xb), region = 106 }
 0x22e   :  { %501 = vsyncpa [#allocation3], 1 }
 0x22f   :  { %503 = vsyncpa [#allocation3 + $0x1], 1 }
 0x230   :  { %504 = vsyncpa [#allocation6], 1 }
 0x231   :  { %506 = vsyncpa [#allocation6 + $0x1], 1 }
 0x232   :  { %507 = vsyncpa [#allocation9], 1 }
 0x233   :  { %508 = vsyncpa [#allocation4], 1 }
 0x234   :  { %510 = vsyncpa [#allocation4 + $0x1], 1 }

</bundles_post_ra>
